<compile_context>
chip_gen: v7x
topology: tpu7x:2x2x1
jax: 0.10.0
libtpu: 0.0.40
codegen_flags: <defaults>
</compile_context>

<pallas_src>
import jax
import jax.numpy as jnp
from jax.experimental import pallas as pl
from jax.experimental.pallas import tpu as pltpu

EPS = 1e-6


def _layernorm_kernel(x_ref, ab_ref, o_ref):
    # x: (tm, D) native dtype in VMEM; ab: (2,) f32 = [alpha, bias] in SMEM.
    x = x_ref[...].astype(jnp.float32)           # math in f32 (v5e VPU/EUP have no bf16)
    d = x.shape[-1]
    mean = jnp.mean(x, axis=-1, keepdims=True)
    cen = x - mean
    # Unbiased variance (torch.std uses Bessel's correction).
    # TODO(synk): d == 1 returns NaN in torch (0/0); guarded here to avoid a trace-time
    # ZeroDivisionError, semantics for d >= 2 are identical.
    var = jnp.sum(cen * cen, axis=-1, keepdims=True) * (1.0 / max(d - 1, 1))
    denom = jnp.sqrt(var) + EPS                  # eps added to std, not variance
    inv = pl.reciprocal(denom, approx=True)      # EUP slot (co-issues with VPU work)
    inv = inv * (2.0 - denom * inv)              # one Newton step -> f32-accurate 1/denom
    scale = ab_ref[0] * inv                      # fold alpha into the (tm,1) scale
    o_ref[...] = (cen * scale + ab_ref[1]).astype(o_ref.dtype)


def pallas_layernorm(x, alpha, bias):
    """LayerNormalization forward. Normalizes over the last dim of `x`.

    Returns the same dtype as `x`.
    """
    orig_shape = x.shape
    orig_dtype = x.dtype
    D = orig_shape[-1]
    M = x.size // D
    x2d = x.reshape(M, D)
    ab = jnp.stack([jnp.asarray(alpha, jnp.float32).reshape(()),
                    jnp.asarray(bias, jnp.float32).reshape(())])

    smem_spec = pl.BlockSpec(memory_space=pltpu.MemorySpace.SMEM)
    dtype_bytes = jnp.dtype(orig_dtype).itemsize

    # Pure HBM-streaming kernel: read + write the slab once, ~8 flops/elem, 2
    # transcendentals per row (approx reciprocal + sqrt).
    cost = pl.CostEstimate(
        flops=8 * M * D,
        transcendentals=2 * M,
        bytes_accessed=2 * M * D * dtype_bytes + ab.size * 4,
    )

    # Row tile targets ~2 MiB of input per step: >90% of HBM roofline on all
    # generations, while in+out double buffering (~4x tile) stays far below
    # v5e's scoped VMEM and v7x's 64 MiB physical VMEM.
    TARGET_TILE_BYTES = 2 << 20
    tm = (TARGET_TILE_BYTES // max(D * dtype_bytes, 1)) // 8 * 8
    tm = int(min(max(tm, 8), 8192))

    # TODO(synk): if D is not lane-dense (< 128 / not a multiple of 128) for a
    # large input, repacking rows into 128-wide lanes would avoid masked vst;
    # full-D blocks are still correct as written.

    if M <= tm:
        # Small input: one resident block, no pipeline overhead.
        out = pl.pallas_call(
            _layernorm_kernel,
            out_shape=jax.ShapeDtypeStruct((M, D), orig_dtype),
            in_specs=[pl.BlockSpec((M, D), lambda: (0, 0)), smem_spec],
            out_specs=pl.BlockSpec((M, D), lambda: (0, 0)),
            cost_estimate=cost,
        )(x2d, ab)
    else:
        # Large input: fixed tile + cdiv grid (padded tail block is harmless:
        # garbage rows are read, their stores are masked).  "parallel" lets the
        # two v7x TensorCores split the rows.
        out = pl.pallas_call(
            _layernorm_kernel,
            out_shape=jax.ShapeDtypeStruct((M, D), orig_dtype),
            grid=(pl.cdiv(M, tm),),
            in_specs=[pl.BlockSpec((tm, D), lambda i: (i, 0)), smem_spec],
            out_specs=pl.BlockSpec((tm, D), lambda i: (i, 0)),
            compiler_params=pltpu.CompilerParams(
                dimension_semantics=("parallel",),
                vmem_limit_bytes=32 << 20,   # covers in+out double buffering everywhere
            ),
            cost_estimate=cost,
        )(x2d, ab)
    return out.reshape(orig_shape)


# ----------------------------- plain-JAX reference ---------------------------

def ref_layernorm(x, alpha, bias):
    x = x.astype(jnp.float32)
    mean = jnp.mean(x, axis=-1, keepdims=True)
    cen = x - mean
    std = jnp.sqrt(jnp.sum(cen * cen, axis=-1, keepdims=True) / (x.shape[-1] - 1))
    return alpha * cen / (std + EPS) + bias


if __name__ == "__main__":
    key = jax.random.PRNGKey(0)
    B, S, D = 2, 8, 128            # lane-dense feature dim (multiple of 128)
    x = jax.random.normal(key, (B, S, D), jnp.float32) * 3.0 + 0.5
    # Module init is alpha=1, bias=0; use non-trivial values to exercise the
    # scale/shift path (they are trainable scalars in the spec).
    alpha = jnp.float32(1.5)
    bias = jnp.float32(0.25)

    # f32 path
    out = jax.block_until_ready(pallas_layernorm(x, alpha, bias))
    ref = ref_layernorm(x, alpha, bias)
    assert out.shape == x.shape and out.dtype == x.dtype
    assert jnp.allclose(out, ref, rtol=1e-4, atol=1e-4), "f32 mismatch vs JAX reference"

    # bf16 path: native-dtype I/O preserved (bf16 in -> bf16 out), f32 math inside.
    xb = x.astype(jnp.bfloat16)
    outb = jax.block_until_ready(pallas_layernorm(xb, alpha, bias))
    refb = ref_layernorm(xb, alpha, bias).astype(jnp.bfloat16)
    assert outb.dtype == jnp.bfloat16
    assert jnp.allclose(outb.astype(jnp.float32), refb.astype(jnp.float32),
                        rtol=3e-2, atol=3e-2), "bf16 mismatch vs JAX reference"

    print("KERNEL_OK")
</pallas_src>

<mosaic_0001>
module attributes {stable_mosaic.version = 11 : i64} {
  func.func @_layernorm_kernel(%arg0: memref<16x128xf32, #tpu.memory_space<vmem>>, %arg1: memref<2xf32, #tpu.memory_space<smem>>, %arg2: memref<16x128xf32, #tpu.memory_space<vmem>>) attributes {dimension_semantics = [], scalar_prefetch = 0 : i64, scratch_operands = 0 : i64, tpu.core_type = #tpu.core_type<tc>} {
    %c0 = arith.constant 0 : index
    %c0_0 = arith.constant 0 : index
    %0 = vector.load %arg0[%c0, %c0_0] : memref<16x128xf32, #tpu.memory_space<vmem>>, vector<16x128xf32>
    %cst = arith.constant dense<0.000000e+00> : vector<16xf32>
    %1 = vector.multi_reduction <add>, %0, %cst [1] : vector<16x128xf32> to vector<16xf32>
    %2 = vector.shape_cast %1 : vector<16xf32> to vector<16x1xf32>
    %cst_1 = arith.constant 1.280000e+02 : f32
    %3 = vector.broadcast %cst_1 : f32 to vector<16x1xf32>
    %4 = arith.divf %2, %3 : vector<16x1xf32>
    %5 = vector.broadcast %4 : vector<16x1xf32> to vector<16x128xf32>
    %6 = arith.subf %0, %5 : vector<16x128xf32>
    %7 = arith.mulf %6, %6 : vector<16x128xf32>
    %cst_2 = arith.constant dense<0.000000e+00> : vector<16xf32>
    %8 = vector.multi_reduction <add>, %7, %cst_2 [1] : vector<16x128xf32> to vector<16xf32>
    %9 = vector.shape_cast %8 : vector<16xf32> to vector<16x1xf32>
    %cst_3 = arith.constant 0.00787401571 : f32
    %10 = vector.broadcast %cst_3 : f32 to vector<16x1xf32>
    %11 = arith.mulf %9, %10 : vector<16x1xf32>
    %12 = math.sqrt %11 : vector<16x1xf32>
    %cst_4 = arith.constant 9.99999997E-7 : f32
    %13 = vector.broadcast %cst_4 : f32 to vector<16x1xf32>
    %14 = arith.addf %12, %13 : vector<16x1xf32>
    %15 = tpu.reciprocal %14 {approx = true} : vector<16x1xf32> -> vector<16x1xf32>
    %16 = arith.mulf %14, %15 : vector<16x1xf32>
    %cst_5 = arith.constant 2.000000e+00 : f32
    %17 = vector.broadcast %cst_5 : f32 to vector<16x1xf32>
    %18 = arith.subf %17, %16 : vector<16x1xf32>
    %19 = arith.mulf %15, %18 : vector<16x1xf32>
    %c0_6 = arith.constant 0 : index
    %20 = memref.load %arg1[%c0_6] : memref<2xf32, #tpu.memory_space<smem>>
    %21 = vector.broadcast %20 : f32 to vector<16x1xf32>
    %22 = arith.mulf %21, %19 : vector<16x1xf32>
    %23 = vector.broadcast %22 : vector<16x1xf32> to vector<16x128xf32>
    %24 = arith.mulf %6, %23 : vector<16x128xf32>
    %c1 = arith.constant 1 : index
    %25 = memref.load %arg1[%c1] : memref<2xf32, #tpu.memory_space<smem>>
    %26 = vector.broadcast %25 : f32 to vector<16x128xf32>
    %27 = arith.addf %24, %26 : vector<16x128xf32>
    %c0_7 = arith.constant 0 : index
    %c0_8 = arith.constant 0 : index
    %28 = vector.load %arg2[%c0_7, %c0_8] : memref<16x128xf32, #tpu.memory_space<vmem>>, vector<16x128xf32>
    tpu.vector_store %arg2[%c0_7, %c0_8], %27 {strides = array<i32>} : memref<16x128xf32, #tpu.memory_space<vmem>>, vector<16x128xf32>,
    return
  }
}

</mosaic_0001>

<bundles_post_ra>
// kernel: tpu_custom_call.1
= control target key start
LH: loop header
LB: loop body
LE: loop exit
PB: predicated region body
PF: predicated region fallthrough
CT: control target
= control target key end

     0   :  { %7 = vsyncpa [#allocation3], 0  ;;  %s241_s0 = inlined_call_operand.hbm [shape: f32[16,128], index: 0, kind: input, shape index: {}]   ;;  %s242_s1 = inlined_call_operand.vmem [shape: f32[2], index: 1, kind: input, shape index: {}]   ;;  %s243_s2 = inlined_call_operand.hbm [shape: f32[16,128], index: 2, kind: output, shape index: {}]  }
   0x1   :  { %8 = vsyncpa [#allocation5], 0 }
   0x2   :  { %9 = vsyncpa [#allocation4], 0  ;;  %s188_s9 = smov [#allocation2]   ;;  %s28_s13 = sshll.u32 %s242_s1, 4  ;;  %s29_s13 = int_to_ptr.vmem [resolvable:$true] %s28_s13 }
   0x3   :  { %s15_s10 = sshll.u32 %s188_s9, 4  ;;  %s126_s16 = scalar_lea.hbm %s241_s0, 256  ;;  %s16_s10 = int_to_ptr.vmem [resolvable:$true] %s15_s10 }
   0x4   :  { %p127_p0 = scmp.ne.s32.totalorder %s241_s0, %s126_s16  ;;  %p130_p1 = scmp.lt.u32.totalorder %s126_s16, %s241_s0 }
   0x6   :  { %p132_p2 = pnand %p130_p1, %p127_p0 }
   0x8   :  { %135 = shalt.err (!%p132_p2)
}
   0x9   :  { %s136_s21 = scalar_lea.vmem %s16_s10, 256  ;;  %p141_p4 = scmp.lt.s32.totalorder %s16_s10, %s16_s10 }
   0xa   :  { %p137_p3 = scmp.ne.s32.totalorder %s16_s10, %s136_s21  ;;  %p142_p5 = scmp.lt.s32.totalorder %s136_s21, %s136_s21 }
   0xc   :  { %p143_p6 = por %p142_p5, %p141_p4 }
   0xe   :  { %p144_p7 = pnand %p143_p6, %p137_p3 }
  0x10   :  { %147 = shalt.err (!%p144_p7)
}
  0x11   :  { %s189_s1 = smov 128   ;;  %s190_s22 = smov 8  }
  0x12   :  { %21 = dma.hbm_to_vmem [thread:$0]  %s241_s0, 256, %s16_s10, [#allocation3], %s189_s1, %s189_s1, %s190_s22  }
  0x13   :  { %s148_s25 = scalar_lea.vmem %s29_s13, 16  ;;  %p153_p9 = scmp.lt.s32.totalorder %s29_s13, %s29_s13 }
  0x14   :  { %p149_p8 = scmp.ne.s32.totalorder %s29_s13, %s148_s25  ;;  %p154_p10 = scmp.lt.s32.totalorder %s148_s25, %s148_s25 }
  0x16   :  { %p155_p11 = por %p154_p10, %p153_p9 }
  0x18   :  { %p156_p12 = pnand %p155_p11, %p149_p8 }
  0x1a   :  { %159 = shalt.err (!%p156_p12)
}
  0x1b   :  { %s191_s26 = smov [#allocation6]  }
  0x1c   :  { %31 = dma.vmem_to_smem %s29_s13, 16, %s191_s26, [#allocation5]  }
  0x1d   :  { %182 = dma.done.wait [#allocation3], 256  }
  0x1e   :  { %183 = vsyncadd [#allocation3], 4294967040 }
  0x1f   :  { %184 = dma.done.wait [#allocation5], 16  }
  0x20   :  { %185 = vsyncadd [#allocation5], 4294967280 }
  0x21   :  { %38 = sfence }
  0x22   :  { %v39_v0 = vld [vmem:[#allocation2] sm:$0xff]  ;;  %v40_v1 = vld [vmem:[#allocation2 + $0x8] sm:$0xff]  ;;  %s82_s0 = sld [smem:[#allocation6]]  ;;  %s112_s27 = sld [smem:[#allocation6 + $0x1]] }
  0x23   :  { %41 = vadd.xlane.f32.xlu0 %v39_v0  ;;  %s192_s28 = smov [#allocation7]  }
  0x24   :  { %s99_s29 = sshll.u32 %s192_s28, 4  ;;  %s100_s29 = int_to_ptr.vmem [resolvable:$true] %s99_s29 }
  0x25   :  { %s160_s30 = scalar_lea.vmem %s100_s29, 256  ;;  %p165_p0 = scmp.lt.s32.totalorder %s100_s29, %s100_s29 }
  0x26   :  { %p161_p13 = scmp.ne.s32.totalorder %s100_s29, %s160_s30  ;;  %p166_p1 = scmp.lt.s32.totalorder %s160_s30, %s160_s30 }
  0x27   :  { %43 = vadd.xlane.f32.xlu0 %v40_v1 }
  0x28   :  { %v83_v30 = vstv %s82_s0  ;;  %v89_v35 = vstv %s112_s27  ;;  %p167_p2 = por %p166_p1, %p165_p0 }
  0x2a   :  { %p168_p3 = pnand %p167_p2, %p161_p13 }
  0xb0   :  { %v42_v2 = vpop.xlane.xlu0 %41 }
  0xb1   :  { %v46_v3 = vmul.f32 0.0078125, %v42_v2 }
  0xb3   :  { %v48_v4 = vsub.f32 %v39_v0, %v46_v3 }
  0xb4   :  { %v44_v5 = vpop.xlane.xlu0 %43 }
  0xb5   :  { %v47_v6 = vmul.f32 0.0078125, %v44_v5  ;;  %v50_v7 = vmul.f32 %v48_v4, %v48_v4 }
  0xb7   :  { %v49_v8 = vsub.f32 %v40_v1, %v47_v6  ;;  %52 = vadd.xlane.f32.xlu1 %v50_v7 }
  0xb9   :  { %v51_v9 = vmul.f32 %v49_v8, %v49_v8 }
  0xbb   :  { %54 = vadd.xlane.f32.xlu1 %v51_v9 }
 0x144   :  { %v53_v10 = vpop.xlane.xlu1 %52 }
 0x145   :  { %v56_v11 = vmul.f32 0.007874016, %v53_v10 }
 0x147   :  { %118 = vrsqrt.f32 %v56_v11  ;;  %vm60_vm0 = vcmp.eq.f32.partialorder %v56_v11, inf  ;;  %v63_v16 = vand.u32 2147483648, %v56_v11  ;;  %vm62_vm1 = vcmp.eq.f32.partialorder %v56_v11, 0.0 }
 0x148   :  { %v55_v12 = vpop.xlane.xlu1 %54 }
 0x149   :  { %v57_v13 = vmul.f32 0.007874016, %v55_v12 }
 0x14b   :  { %120 = vrsqrt.f32 %v57_v13  ;;  %vm67_vm2 = vcmp.eq.f32.partialorder %v57_v13, inf  ;;  %v70_v22 = vand.u32 2147483648, %v57_v13  ;;  %vm69_vm3 = vcmp.eq.f32.partialorder %v57_v13, 0.0 }
 0x151   :  { %v119_v14 = vpop.eup %118 }
 0x152   :  { %v59_v15 = vmul.f32 %v119_v14, %v56_v11 }
 0x154   :  { %v61_v17 = vsel %vm60_vm0, %v56_v11, %v59_v15 }
 0x155   :  { %v121_v18 = vpop.eup %120  ;;  %v64_v19 = vsel %vm62_vm1, %v63_v16, %v61_v17 }
 0x156   :  { %v66_v20 = vmul.f32 %v121_v18, %v57_v13  ;;  %v72_v21 = vadd.f32 1e-06, %v64_v19 }
 0x158   :  { %v68_v23 = vsel %vm67_vm2, %v57_v13, %v66_v20  ;;  %122 = vrcp.f32 %v72_v21 }
 0x159   :  { %v71_v24 = vsel %vm69_vm3, %v70_v22, %v68_v23 }
 0x15a   :  { %v73_v25 = vadd.f32 1e-06, %v71_v24 }
 0x15c   :  { %124 = vrcp.f32 %v73_v25 }
 0x162   :  { %v123_v26 = vpop.eup %122 }
 0x163   :  { %v76_v27 = vmul.f32 %v123_v26, %v72_v21 }
 0x165   :  { %v78_v28 = vsub.f32 2.0, %v76_v27 }
 0x166   :  { %v125_v29 = vpop.eup %124 }
 0x167   :  { %v77_v31 = vmul.f32 %v125_v29, %v73_v25  ;;  %v80_v32 = vmul.f32 %v123_v26, %v78_v28 }
 0x169   :  { %v79_v33 = vsub.f32 2.0, %v77_v31  ;;  %v84_v34 = vmul.f32 %v83_v30, %v80_v32 }
 0x16b   :  { %v81_v36 = vmul.f32 %v125_v29, %v79_v33  ;;  %v86_v37 = vmul.f32 %v84_v34, %v48_v4 }
 0x16d   :  { %v85_v38 = vmul.f32 %v83_v30, %v81_v36  ;;  %v90_v39 = vadd.f32 %v89_v35, %v86_v37 }
 0x16f   :  { %v87_v40 = vmul.f32 %v85_v38, %v49_v8  ;;  %92 = vst [vmem:[#allocation7] sm:$0xff] %v90_v39 }
 0x171   :  { %v91_v41 = vadd.f32 %v89_v35, %v87_v40 }
 0x173   :  { %93 = vst [vmem:[#allocation7 + $0x8] sm:$0xff] %v91_v41 }
 0x174   :  { %171 = shalt.err (!%p168_p3)
}
 0x175   :  { %s172_s5 = scalar_lea.hbm %s243_s2, 256 }
 0x176   :  { %p173_p4 = scmp.ne.s32.totalorder %s243_s2, %s172_s5  ;;  %p176_p5 = scmp.lt.u32.totalorder %s172_s5, %s243_s2 }
 0x178   :  { %p178_p6 = pnand %p176_p5, %p173_p4 }
 0x17a   :  { %181 = shalt.err (!%p178_p6)
}
 0x17b   :  { %105 = dma.vmem_to_hbm [thread:$0]  %s100_s29, 256, %s243_s2, [#allocation4], %s189_s1, %s189_s1, %s190_s22  }
 0x17c   :  { %186 = dma.done.wait [#allocation4], 256  }
 0x17d   :  { %187 = vsyncadd [#allocation4], 4294967040 }
 0x17e   :  { %109 = vsyncpa [#allocation3], 1 }
 0x17f   :  { %110 = vsyncpa [#allocation4], 1 }
 0x180   :  { %111 = vsyncpa [#allocation5], 1 }

</bundles_post_ra>
